<compile_context>
chip_gen: v7x
topology: tpu7x:2x2x1
jax: 0.10.0
libtpu: 0.0.40
codegen_flags: <defaults>
</compile_context>

<pallas_src>
import jax
import jax.numpy as jnp
from jax.experimental import pallas as pl
from jax.experimental.pallas import tpu as pltpu

LANES = 128
# Row multiple legal for f32 (8,128), bf16 (16,128) and int8/fp8 (32,128) tiling.
_ROW_PACK = 32
# Per-block byte budget. 8 MiB blocks keep the ~0.35 us per-grid-step overhead
# at a few percent of the HBM step time even at v7x's 3.2 TB/s, while the
# double-buffered in+out footprint (~32 MiB) stays well inside v7x's 64 MiB
# physical VMEM once vmem_limit_bytes is raised.
_BLOCK_BYTES = 8 * 1024 * 1024
_MIN_GRID_STEPS = 4


def _relu_der_kernel(x_ref, o_ref):
    # forward of ReLUDer: ceil(clamp(x, 0, 1)) — pure VPU compare/select/ceil.
    # Do NOT rewrite as (x > 0) select: that would change NaN passthrough.
    o_ref[...] = jnp.ceil(jnp.clip(x_ref[...], 0.0, 1.0)).astype(o_ref.dtype)


def _round_up(a: int, m: int) -> int:
    return -(-a // m) * m


def _choose_tile(rows: int, itemsize: int):
    """Pick (tile_rows, grid_steps) for a [rows, 128] slab."""
    budget_rows = max(
        _ROW_PACK, (_BLOCK_BYTES // (LANES * itemsize)) // _ROW_PACK * _ROW_PACK
    )
    if rows <= budget_rows:
        # Small/medium input: aim for >= _MIN_GRID_STEPS grid steps so the
        # BlockSpec pipeline overlaps DMA-in / compute / DMA-out and the
        # parallel axis can be sharded across v7x's two TensorCores.
        tr = _round_up(-(-rows // _MIN_GRID_STEPS), _ROW_PACK)
        if tr >= rows:
            # Too small to split into legal (multiple-of-32, 128) tiles:
            # single full-array block (always a legal block shape).
            return rows, 1
        return tr, -(-rows // tr)
    return budget_rows, -(-rows // budget_rows)


def _relu_der_slab(slab: jax.Array) -> jax.Array:
    rows, lanes = slab.shape
    assert lanes == LANES
    itemsize = jnp.dtype(slab.dtype).itemsize
    tr, steps = _choose_tile(rows, itemsize)

    # in + out, double-buffered (4 live blocks) + headroom for internal scratch.
    vmem_need = 4 * tr * LANES * itemsize + (4 << 20)
    vmem_limit = int(min(max(vmem_need, 16 << 20), 48 << 20))

    return pl.pallas_call(
        _relu_der_kernel,
        out_shape=jax.ShapeDtypeStruct((rows, LANES), slab.dtype),
        grid_spec=pltpu.PrefetchScalarGridSpec(
            num_scalar_prefetch=0,
            grid=(steps,),
            in_specs=[pl.BlockSpec((tr, LANES), lambda i: (i, 0))],
            out_specs=pl.BlockSpec((tr, LANES), lambda i: (i, 0)),
        ),
        compiler_params=pltpu.CompilerParams(
            dimension_semantics=("parallel",),
            vmem_limit_bytes=vmem_limit,
        ),
        cost_estimate=pl.CostEstimate(
            flops=3 * rows * LANES,
            transcendentals=0,
            bytes_accessed=2 * rows * LANES * itemsize,
        ),
    )(slab)


def relu_der(x: jax.Array) -> jax.Array:
    """Pallas TPU implementation of ReLUDer.forward: ceil(clamp(x, 0, 1))."""
    orig_shape = x.shape
    orig_dtype = x.dtype
    n = x.size
    if n == 0:
        return x

    if not jnp.issubdtype(orig_dtype, jnp.floating):
        # Integer/bool inputs: keep them off the float kernel path to avoid
        # silent truncation; plain jnp gives the exact ceil(clip) semantics.
        return jnp.ceil(jnp.clip(x, 0, 1)).astype(orig_dtype).reshape(orig_shape)

    flat = jnp.ravel(x)
    rem = n % LANES
    n_main = n - rem

    parts = []
    if n_main > 0:
        slab = flat[:n_main].reshape(n_main // LANES, LANES)
        parts.append(_relu_der_slab(slab).reshape(-1))
    if rem > 0:
        # <128-element tail handled with plain jnp — avoids a full-array
        # pad + slice (two extra HBM passes) on non-aligned sizes.
        tail = flat[n_main:]
        parts.append(jnp.ceil(jnp.clip(tail, 0.0, 1.0)).astype(orig_dtype))

    out_flat = parts[0] if len(parts) == 1 else jnp.concatenate(parts)
    return out_flat.reshape(orig_shape)


if __name__ == "__main__":
    key = jax.random.PRNGKey(0)
    # small shape consistent with a generic NCHW tensor input
    x = jax.random.normal(key, (2, 4, 16, 16), dtype=jnp.float32)

    y = relu_der(x)
    jax.block_until_ready(y)

    # correctness check against plain JAX reference of the PyTorch forward
    y_ref = jnp.ceil(jnp.clip(x, 0.0, 1.0))
    assert y.shape == x.shape and y.dtype == x.dtype
    assert jnp.allclose(y, y_ref, atol=0.0, rtol=0.0)

    # also exercise a non-128-aligned tail path
    x2 = jax.random.normal(jax.random.PRNGKey(1), (3, 5, 7), dtype=jnp.float32)
    y2 = relu_der(x2)
    jax.block_until_ready(y2)
    assert jnp.allclose(y2, jnp.ceil(jnp.clip(x2, 0.0, 1.0)), atol=0.0, rtol=0.0)

    print("KERNEL_OK")
</pallas_src>

<mosaic_0001>
module attributes {stable_mosaic.version = 11 : i64} {
  func.func @_relu_der_kernel(%arg0: i32, %arg1: memref<16x128xf32, #tpu.memory_space<vmem>>, %arg2: memref<16x128xf32, #tpu.memory_space<vmem>>) attributes {dimension_semantics = [#tpu.dimension_semantics<parallel>], iteration_bounds = array<i64: 1>, scalar_prefetch = 0 : i64, scratch_operands = 0 : i64, tpu.core_type = #tpu.core_type<tc>, window_params = [{transform_indices = @transform_0, window_bounds = array<i64: 16, 128>}, {transform_indices = @transform_1, window_bounds = array<i64: 16, 128>}]} {
    %c0 = arith.constant 0 : index
    %c0_0 = arith.constant 0 : index
    %0 = vector.load %arg1[%c0, %c0_0] : memref<16x128xf32, #tpu.memory_space<vmem>>, vector<16x128xf32>
    %cst = arith.constant 0.000000e+00 : f32
    %cst_1 = arith.constant 1.000000e+00 : f32
    %1 = vector.broadcast %cst : f32 to vector<16x128xf32>
    %2 = arith.maximumf %1, %0 : vector<16x128xf32>
    %3 = vector.broadcast %cst_1 : f32 to vector<16x128xf32>
    %4 = arith.minimumf %3, %2 : vector<16x128xf32>
    %5 = math.ceil %4 : vector<16x128xf32>
    %c0_2 = arith.constant 0 : index
    %c0_3 = arith.constant 0 : index
    %6 = vector.load %arg2[%c0_2, %c0_3] : memref<16x128xf32, #tpu.memory_space<vmem>>, vector<16x128xf32>
    tpu.vector_store %arg2[%c0_2, %c0_3], %5 {strides = array<i32>} : memref<16x128xf32, #tpu.memory_space<vmem>>, vector<16x128xf32>,
    return
  }
  func.func @transform_0(%arg0: i32) -> (i32, i32) {
    %c0_i32 = arith.constant 0 : i32
    %c0_i32_0 = arith.constant 0 : i32
    return %arg0, %c0_i32 : i32, i32
  }
  func.func @transform_1(%arg0: i32) -> (i32, i32) {
    %c0_i32 = arith.constant 0 : i32
    %c0_i32_0 = arith.constant 0 : i32
    return %arg0, %c0_i32 : i32, i32
  }
}

</mosaic_0001>

<bundles_post_ra>
// kernel: tpu_custom_call.1
= control target key start
LH: loop header
LB: loop body
LE: loop exit
PB: predicated region body
PF: predicated region fallthrough
CT: control target
= control target key end

     0   :  { %6 = vsyncpa [#allocation3], 0  ;;  %s146_s0 = inlined_call_operand.hbm [shape: f32[16,128], index: 0, kind: input, shape index: {}]   ;;  %s147_s1 = inlined_call_operand.hbm [shape: f32[16,128], index: 1, kind: output, shape index: {}]  }
   0x1   :  { %7 = vsyncpa [#allocation4], 0  ;;  %s102_s6 = smov [#allocation2]   ;;  %s54_s10 = scalar_lea.hbm %s146_s0, 256 }
   0x2   :  { %s13_s7 = sshll.u32 %s102_s6, 4  ;;  %p55_p0 = scmp.ne.s32.totalorder %s146_s0, %s54_s10  ;;  %s14_s7 = int_to_ptr.vmem [resolvable:$true] %s13_s7 }
   0x3   :  { %p58_p1 = scmp.lt.u32.totalorder %s54_s10, %s146_s0 }
   0x5   :  { %p60_p2 = pnand %p58_p1, %p55_p0 }
   0x7   :  { %63 = shalt.err (!%p60_p2)
}
   0x8   :  { %s64_s15 = scalar_lea.vmem %s14_s7, 256  ;;  %p69_p4 = scmp.lt.s32.totalorder %s14_s7, %s14_s7 }
   0x9   :  { %p65_p3 = scmp.ne.s32.totalorder %s14_s7, %s64_s15  ;;  %p70_p5 = scmp.lt.s32.totalorder %s64_s15, %s64_s15 }
   0xb   :  { %p71_p6 = por %p70_p5, %p69_p4 }
   0xd   :  { %p72_p7 = pnand %p71_p6, %p65_p3 }
   0xf   :  { %75 = shalt.err (!%p72_p7)
}
  0x10   :  { %s103_s16 = smov 128   ;;  %s104_s17 = smov 8  }
  0x11   :  { %19 = dma.hbm_to_vmem [thread:$0]  %s146_s0, 256, %s14_s7, [#allocation3], %s103_s16, %s103_s16, %s104_s17  }
  0x12   :  { %98 = dma.done.wait [#allocation3], 256  }
  0x13   :  { %99 = vsyncadd [#allocation3], 4294967040  ;;  %v23_v0 = vld [vmem:[#allocation2] sm:$0xff]  ;;  %v24_v1 = vld [vmem:[#allocation2 + $0x8] sm:$0xff]  ;;  %s105_s20 = smov [#allocation5]  }
  0x14   :  { %v25_v2 = vmax.f32 %v23_v0, 0.0  ;;  %v26_v3 = vmax.f32 %v24_v1, 0.0  ;;  %s38_s21 = sshll.u32 %s105_s20, 4  ;;  %s39_s21 = int_to_ptr.vmem [resolvable:$true] %s38_s21 }
  0x15   :  { %s76_s22 = scalar_lea.vmem %s39_s21, 256  ;;  %p81_p9 = scmp.lt.s32.totalorder %s39_s21, %s39_s21 }
  0x16   :  { %v27_v4 = vmin.f32 %v25_v2, 1.0  ;;  %v28_v5 = vmin.f32 %v26_v3, 1.0  ;;  %p77_p8 = scmp.ne.s32.totalorder %s39_s21, %s76_s22  ;;  %p82_p10 = scmp.lt.s32.totalorder %s76_s22, %s76_s22 }
  0x18   :  { %v29_v6 = vceil.f32 %v27_v4  ;;  %v30_v7 = vceil.f32 %v28_v5  ;;  %p83_p11 = por %p82_p10, %p81_p9 }
  0x1a   :  { %31 = vst [vmem:[#allocation5] sm:$0xff] %v29_v6  ;;  %32 = vst [vmem:[#allocation5 + $0x8] sm:$0xff] %v30_v7  ;;  %p84_p12 = pnand %p83_p11, %p77_p8 }
  0x1c   :  { %87 = shalt.err (!%p84_p12)
}
  0x1d   :  { %s88_s24 = scalar_lea.hbm %s147_s1, 256 }
  0x1e   :  { %p89_p13 = scmp.ne.s32.totalorder %s147_s1, %s88_s24  ;;  %p92_p0 = scmp.lt.u32.totalorder %s88_s24, %s147_s1 }
  0x20   :  { %p94_p1 = pnand %p92_p0, %p89_p13 }
  0x22   :  { %97 = shalt.err (!%p94_p1)
}
  0x23   :  { %44 = dma.vmem_to_hbm [thread:$0]  %s39_s21, 256, %s147_s1, [#allocation4], %s103_s16, %s103_s16, %s104_s17  }
  0x24   :  { %100 = dma.done.wait [#allocation4], 256  }
  0x25   :  { %101 = vsyncadd [#allocation4], 4294967040 }
  0x26   :  { %48 = vsyncpa [#allocation3], 1 }
  0x27   :  { %49 = vsyncpa [#allocation4], 1 }

</bundles_post_ra>
